<compile_context>
chip_gen: v7x
topology: tpu7x:2x2x1
jax: 0.10.0
libtpu: 0.0.40
codegen_flags: <defaults>
</compile_context>

<pallas_src>
import math

import jax
import jax.numpy as jnp
from jax.experimental import pallas as pl
from jax.experimental.pallas import tpu as pltpu


# -----------------------------------------------------------------------------
# Fused kernel (transposed layout: batch lives on the lane axis)
# -----------------------------------------------------------------------------
def _make_event_network_kernel(levels, ind_dim, htot, get_event_probs, blockable):
    """levels: static tuple of (R, H, Nb, hidden_offset, prob_offset) per level."""

    def kernel(xT_ref, w1T_ref, b1T_ref, w2T_ref, b2T_ref, *out_refs):
        xT = xT_ref[...]                                          # [F, Bt]

        # ---- stage 1: ONE matmul for every branch hidden layer + indicator ----
        h1 = jnp.dot(w1T_ref[...], xT,
                     preferred_element_type=jnp.float32) + b1T_ref[...]   # [Hd, Bt]
        hid = jnp.maximum(h1[:htot, :], 0.0)                      # ReLU hiddens
        g = h1[htot:htot + ind_dim, :]                            # indicator logits
        got = 1.0 / (1.0 + jnp.exp(-g))                           # exact sigmoid

        # ---- stage 2: ONE block-diagonal matmul covering every branch p-layer ----
        # TODO(synk): for deep hierarchies split this into one packed dot per level
        # to avoid the R x zero-padding FLOPs / bytes of the block-diagonal matrix.
        pre = jnp.dot(w2T_ref[...], hid,
                      preferred_element_type=jnp.float32) + b2T_ref[...]  # [Ptot, Bt]

        # level-0 scale & tail base, hoisted out of the unrolled loops.
        if get_event_probs:
            scale0 = got[0:1, :] * got[1:2, :] if blockable else got
            rem_base = got[1:2, :] if blockable else None
        elif blockable:
            scale0, rem_base = got[1:2, :], None
        else:
            scale0, rem_base = None, None

        for li, (R, H, Nb, hoff, poff) in enumerate(levels):
            out_ref = out_refs[li]
            rows = []
            for j in range(R):
                logits = pre[poff + j * Nb: poff + (j + 1) * Nb, :]       # [Nb, Bt]
                if Nb == 2:
                    # 2-class softmax == sigmoid of the logit difference (no XLU).
                    p1 = 1.0 / (1.0 + jnp.exp(logits[0:1, :] - logits[1:2, :]))
                    p = jnp.concatenate([1.0 - p1, p1], axis=0)
                else:
                    m = jnp.max(logits, axis=0, keepdims=True)
                    e = jnp.exp(logits - m)
                    p = e / jnp.sum(e, axis=0, keepdims=True)             # exact recip
                if li == 0:
                    scale = scale0
                else:
                    nb_prev = levels[li - 1][2]
                    pn, col = divmod(j, nb_prev)
                    # parent column re-read from the already written previous-level
                    # output block (VMEM, f32) -> bounds vreg live ranges.
                    scale = out_refs[li - 1][pn * nb_prev + col:
                                             pn * nb_prev + col + 1, :]
                rows.append(p if scale is None else p * scale)

            if get_event_probs:
                if blockable:
                    tot = None                   # pure VPU row adds, no XLU reduce
                    for sp in rows:
                        for q in range(sp.shape[0]):
                            r = sp[q:q + 1, :]
                            tot = r if tot is None else tot + r
                    rem = rem_base - tot
                else:
                    rem = 1.0 - got
                rows.append(rem)

            block = rows[0] if len(rows) == 1 else jnp.concatenate(rows, axis=0)
            out_ref[...] = block.astype(out_ref.dtype)     # ONE wide store per level

    return kernel


# -----------------------------------------------------------------------------
# Wrapper
# -----------------------------------------------------------------------------
def _auto_batch_block(B, bytes_per_col, *, vmem_budget_bytes=8 << 20,
                      max_block=8192, min_block=512):
    """Pick a lane (batch) tile: big tiles amortize the ~0.35us/step overhead,
    >=2 grid steps let a v7x megacore split the batch, small problems skip the
    grid entirely (best on the single-TC v5e/v6e)."""
    if B <= min_block:
        return None
    cap = max(min_block,
              min(max_block, (vmem_budget_bytes // max(bytes_per_col, 1)) // 128 * 128))
    return min(cap, 128 * pl.cdiv(pl.cdiv(B, 2), 128))


def event_network_forward(inp, packed, *, batch_block=None):
    """Fused event_network forward; returns the per-level [B, R*Nb(+1)] tensors."""
    (w1T, b1T, w2T, b2T, levels, ind_dim, htot, ptot,
     get_event_probs, blockable) = packed
    B, F = inp.shape
    extra = 1 if get_event_probs else 0
    widths = [R * Nb + extra for (R, H, Nb, _, _) in levels]
    kernel = _make_event_network_kernel(tuple(levels), ind_dim, htot,
                                        get_event_probs, blockable)

    xT = inp.T                           # batch -> lane axis inside the kernel
    dtype = inp.dtype

    if batch_block is None:
        # rough f32 bytes per batch column (in/out double-buffered + intermediates)
        bytes_per_col = 4 * (F + (htot + ind_dim) + ptot + sum(widths)) * 3
        batch_block = _auto_batch_block(B, bytes_per_col)

    if batch_block is None or batch_block >= B:
        # whole problem fits comfortably in VMEM: one invocation, no grid.
        vmem = pl.BlockSpec(memory_space=pltpu.MemorySpace.VMEM)
        outsT = pl.pallas_call(
            kernel,
            out_shape=tuple(jax.ShapeDtypeStruct((w, B), dtype) for w in widths),
            in_specs=[vmem] * 5,
            out_specs=tuple(vmem for _ in widths),
        )(xT, w1T, b1T, w2T, b2T)
    else:
        bb = int(128 * pl.cdiv(int(batch_block), 128))      # lane-aligned tile
        Bp = int(bb * pl.cdiv(B, bb))
        if Bp != B:
            xT = jnp.pad(xT, ((0, 0), (0, Bp - B)))          # zero pad, sliced off below

        def _pinned(shape):                                  # weights stay VMEM resident
            return pl.BlockSpec(shape, lambda b: (0, 0))

        outsT = pl.pallas_call(
            kernel,
            out_shape=tuple(jax.ShapeDtypeStruct((w, Bp), dtype) for w in widths),
            grid=(Bp // bb,),
            in_specs=[pl.BlockSpec((F, bb), lambda b: (0, b)),
                      _pinned(w1T.shape), _pinned(b1T.shape),
                      _pinned(w2T.shape), _pinned(b2T.shape)],
            out_specs=tuple(pl.BlockSpec((w, bb), lambda b: (0, b)) for w in widths),
            compiler_params=pltpu.CompilerParams(
                dimension_semantics=("parallel",)),          # v7x: both TCs split batch
        )(xT, w1T, b1T, w2T, b2T)
        outsT = [o[:, :B] for o in outsT]

    return [o.T for o in outsT]


# -----------------------------------------------------------------------------
# Parameter construction (mirrors event_network.__init__) and packing
# -----------------------------------------------------------------------------
def _init_linear(key, in_dim, out_dim):
    kw, kb = jax.random.split(key)
    a = math.sqrt(6.0 / (in_dim + out_dim))          # xavier_uniform_
    w = jax.random.uniform(kw, (in_dim, out_dim), jnp.float32, -a, a)
    bound = 1.0 / math.sqrt(in_dim)                  # torch Linear default bias init
    b = jax.random.uniform(kb, (1, out_dim), jnp.float32, -bound, bound)
    return w, b


def build_event_network_params(key, layer_sizes, num_bins, blockable):
    F = layer_sizes[0][0]
    ind_dim = 2 if blockable else 1
    keys = iter(jax.random.split(key, 4 * num_bins * len(layer_sizes) + 8))

    levels_raw = []
    num_reps = 1
    for i in range(len(layer_sizes) - 1):
        if num_bins % layer_sizes[i][1] != 0:
            raise ValueError("Invalid divisions")
        H, Nb = layer_sizes[i + 1]
        level = []
        for _ in range(num_reps):
            wx, bx = _init_linear(next(keys), F, H)
            wp, bp = _init_linear(next(keys), H, Nb)
            level.append((wx, bx, wp, bp))
        levels_raw.append(level)
        num_reps *= Nb
    indicator = _init_linear(next(keys), F, ind_dim)
    return levels_raw, indicator


def pack_event_network_params(levels_raw, indicator, get_event_probs, blockable):
    """Pack every branch weight into two TRANSPOSED matrices (one MXU dot each)."""
    wind, bind = indicator
    ind_dim = wind.shape[1]

    levels = []
    hoff = poff = 0
    w1_rows, b1_rows = [], []
    for level in levels_raw:
        R = len(level)
        H = level[0][0].shape[1]
        Nb = level[0][2].shape[1]
        for (wx, bx, _, _) in level:
            w1_rows.append(wx.T)                     # [H, F]
            b1_rows.append(bx.T)                     # [H, 1]
        levels.append((R, H, Nb, hoff, poff))
        hoff += R * H
        poff += R * Nb
    htot, ptot = hoff, poff

    # stage-1 packed weight (transposed): every branch Wx^T, indicator last rows.
    w1T = jnp.concatenate(w1_rows + [wind.T], axis=0)      # [htot + ind, F]
    b1T = jnp.concatenate(b1_rows + [bind.T], axis=0)      # [htot + ind, 1]

    # stage-2 block-diagonal packed weight (transposed) over every branch p-layer.
    w2T = jnp.zeros((ptot, htot), jnp.float32)
    b2_rows = []
    for (R, H, Nb, ho, po), level in zip(levels, levels_raw):
        for r, (_, _, wp, bp) in enumerate(level):
            w2T = w2T.at[po + r * Nb: po + (r + 1) * Nb,
                         ho + r * H: ho + (r + 1) * H].set(wp.T)
            b2_rows.append(bp.T)
    b2T = jnp.concatenate(b2_rows, axis=0)                 # [ptot, 1]

    return (w1T, b1T, w2T, b2T, tuple(levels), ind_dim, htot, ptot,
            get_event_probs, blockable)


# -----------------------------------------------------------------------------
# Pure-JAX reference (mirrors event_network.forward, return_pre=False)
# -----------------------------------------------------------------------------
def _ref_forward(inp, levels_raw, indicator, layer_sizes, get_event_probs, blockable):
    wind, bind = indicator
    got = jax.nn.sigmoid(inp @ wind + bind)
    probs = []
    for i, level in enumerate(levels_raw):
        probs.append([])
        for j, (wx, bx, wp, bp) in enumerate(level):
            h = jnp.maximum(inp @ wx + bx, 0.0)
            p = jax.nn.softmax(h @ wp + bp, axis=1)
            if i > 0:
                parent_net = j // int(layer_sizes[i][1])
                parent = probs[i - 1][parent_net]
                p = p * parent[:, j % parent.shape[1]][:, None]
            else:
                if get_event_probs:
                    p = p * (jnp.prod(got, axis=1, keepdims=True) if blockable else got)
                elif blockable:
                    p = p * got[:, 1:2]
            probs[i].append(p)
    outs = []
    for i in range(len(probs)):
        cat = jnp.concatenate(probs[i], axis=1)
        if get_event_probs:
            if blockable:
                rem = got[:, 1:2] - jnp.sum(cat, axis=1, keepdims=True)
                cat = jnp.concatenate([cat, rem], axis=1)
            else:
                cat = jnp.concatenate([cat, 1.0 - got], axis=1)
        outs.append(cat)
    return outs


# -----------------------------------------------------------------------------
if __name__ == "__main__":
    # layer_sizes = [(in_features, 1), (hidden, splits), ...]; num_bins = prod(splits)
    layer_sizes = [(32, 1), (16, 2), (8, 2)]
    num_bins = 4

    scenarios = [
        # (get_event_probs, blockable, batch, batch_block)
        (True, False, 8, None),       # tiny batch -> single no-grid invocation
        (True, True, 1024, None),     # auto tile (512) -> 2 "parallel" grid steps
        (False, True, 300, 256),      # explicit tile + zero-padded ragged batch
        (False, False, 16, None),     # no scaling / no tail-column path
    ]

    key = jax.random.PRNGKey(0)
    for (gep, blk, B, bblock) in scenarios:
        key, pkey, xkey = jax.random.split(key, 3)
        levels_raw, indicator = build_event_network_params(
            pkey, layer_sizes, num_bins, blk)
        packed = pack_event_network_params(levels_raw, indicator, gep, blk)
        inp = jax.random.normal(xkey, (B, layer_sizes[0][0]), jnp.float32)

        out = event_network_forward(inp, packed, batch_block=bblock)
        out = jax.block_until_ready(out)

        ref = _ref_forward(inp, levels_raw, indicator, layer_sizes, gep, blk)
        assert len(out) == len(ref)
        for a, b in zip(out, ref):
            assert a.shape == b.shape, (a.shape, b.shape)
            err = float(jnp.max(jnp.abs(a - b)))
            # exact reciprocals everywhere now; slack only for default MXU precision.
            assert err < 1e-3, err

    print("KERNEL_OK")
</pallas_src>

<mosaic_0001>
module attributes {stable_mosaic.version = 11 : i64} {
  func.func @kernel(%arg0: memref<32x8xf32, #tpu.memory_space<vmem>>, %arg1: memref<33x32xf32, #tpu.memory_space<vmem>>, %arg2: memref<33x1xf32, #tpu.memory_space<vmem>>, %arg3: memref<6x32xf32, #tpu.memory_space<vmem>>, %arg4: memref<6x1xf32, #tpu.memory_space<vmem>>, %arg5: memref<3x8xf32, #tpu.memory_space<vmem>>, %arg6: memref<5x8xf32, #tpu.memory_space<vmem>>) attributes {dimension_semantics = [], scalar_prefetch = 0 : i64, scratch_operands = 0 : i64, tpu.core_type = #tpu.core_type<tc>} {
    %c0 = arith.constant 0 : index
    %c0_0 = arith.constant 0 : index
    %0 = vector.load %arg0[%c0, %c0_0] : memref<32x8xf32, #tpu.memory_space<vmem>>, vector<32x8xf32>
    %c0_1 = arith.constant 0 : index
    %c0_2 = arith.constant 0 : index
    %1 = vector.load %arg1[%c0_1, %c0_2] : memref<33x32xf32, #tpu.memory_space<vmem>>, vector<33x32xf32>
    %cst = arith.constant dense<0.000000e+00> : vector<33x8xf32>
    %2 = tpu.matmul %1, %0, %cst {dimension_numbers = #tpu.dot_dimension_numbers<[1], [0], [0], [1], [0, 0, 1, 1], [], []>} : vector<33x32xf32>, vector<32x8xf32>, vector<33x8xf32> -> vector<33x8xf32>
    %c0_3 = arith.constant 0 : index
    %c0_4 = arith.constant 0 : index
    %3 = vector.load %arg2[%c0_3, %c0_4] : memref<33x1xf32, #tpu.memory_space<vmem>>, vector<33x1xf32>
    %4 = vector.broadcast %3 : vector<33x1xf32> to vector<33x8xf32>
    %5 = arith.addf %2, %4 : vector<33x8xf32>
    %6 = vector.extract_strided_slice %5 {offsets = [0, 0], sizes = [32, 8], strides = [1, 1]} : vector<33x8xf32> to vector<32x8xf32>
    %cst_5 = arith.constant 0.000000e+00 : f32
    %7 = vector.broadcast %cst_5 : f32 to vector<32x8xf32>
    %8 = arith.maximumf %6, %7 : vector<32x8xf32>
    %9 = vector.extract_strided_slice %5 {offsets = [32, 0], sizes = [1, 8], strides = [1, 1]} : vector<33x8xf32> to vector<1x8xf32>
    %cst_6 = arith.constant 0.000000e+00 : f32
    %10 = vector.broadcast %cst_6 : f32 to vector<1x8xf32>
    %11 = arith.subf %10, %9 : vector<1x8xf32>
    %12 = math.exp %11 : vector<1x8xf32>
    %cst_7 = arith.constant 1.000000e+00 : f32
    %13 = vector.broadcast %cst_7 : f32 to vector<1x8xf32>
    %14 = arith.addf %13, %12 : vector<1x8xf32>
    %cst_8 = arith.constant 1.000000e+00 : f32
    %15 = vector.broadcast %cst_8 : f32 to vector<1x8xf32>
    %16 = arith.divf %15, %14 : vector<1x8xf32>
    %c0_9 = arith.constant 0 : index
    %c0_10 = arith.constant 0 : index
    %17 = vector.load %arg3[%c0_9, %c0_10] : memref<6x32xf32, #tpu.memory_space<vmem>>, vector<6x32xf32>
    %cst_11 = arith.constant dense<0.000000e+00> : vector<6x8xf32>
    %18 = tpu.matmul %17, %8, %cst_11 {dimension_numbers = #tpu.dot_dimension_numbers<[1], [0], [0], [1], [0, 0, 1, 1], [], []>} : vector<6x32xf32>, vector<32x8xf32>, vector<6x8xf32> -> vector<6x8xf32>
    %c0_12 = arith.constant 0 : index
    %c0_13 = arith.constant 0 : index
    %19 = vector.load %arg4[%c0_12, %c0_13] : memref<6x1xf32, #tpu.memory_space<vmem>>, vector<6x1xf32>
    %20 = vector.broadcast %19 : vector<6x1xf32> to vector<6x8xf32>
    %21 = arith.addf %18, %20 : vector<6x8xf32>
    %22 = vector.extract_strided_slice %21 {offsets = [0, 0], sizes = [2, 8], strides = [1, 1]} : vector<6x8xf32> to vector<2x8xf32>
    %23 = vector.extract_strided_slice %22 {offsets = [0, 0], sizes = [1, 8], strides = [1, 1]} : vector<2x8xf32> to vector<1x8xf32>
    %24 = vector.extract_strided_slice %22 {offsets = [1, 0], sizes = [1, 8], strides = [1, 1]} : vector<2x8xf32> to vector<1x8xf32>
    %25 = arith.subf %23, %24 : vector<1x8xf32>
    %26 = math.exp %25 : vector<1x8xf32>
    %cst_14 = arith.constant 1.000000e+00 : f32
    %27 = vector.broadcast %cst_14 : f32 to vector<1x8xf32>
    %28 = arith.addf %27, %26 : vector<1x8xf32>
    %cst_15 = arith.constant 1.000000e+00 : f32
    %29 = vector.broadcast %cst_15 : f32 to vector<1x8xf32>
    %30 = arith.divf %29, %28 : vector<1x8xf32>
    %cst_16 = arith.constant 1.000000e+00 : f32
    %31 = vector.broadcast %cst_16 : f32 to vector<1x8xf32>
    %32 = arith.subf %31, %30 : vector<1x8xf32>
    %33 = tpu.concatenate %32, %30 in 0 : vector<1x8xf32>, vector<1x8xf32> -> vector<2x8xf32>
    %34 = vector.broadcast %16 : vector<1x8xf32> to vector<2x8xf32>
    %35 = arith.mulf %33, %34 : vector<2x8xf32>
    %cst_17 = arith.constant 1.000000e+00 : f32
    %36 = vector.broadcast %cst_17 : f32 to vector<1x8xf32>
    %37 = arith.subf %36, %16 : vector<1x8xf32>
    %38 = tpu.concatenate %35, %37 in 0 : vector<2x8xf32>, vector<1x8xf32> -> vector<3x8xf32>
    %c0_18 = arith.constant 0 : index
    %c0_19 = arith.constant 0 : index
    %39 = vector.load %arg5[%c0_18, %c0_19] : memref<3x8xf32, #tpu.memory_space<vmem>>, vector<3x8xf32>
    tpu.vector_store %arg5[%c0_18, %c0_19], %38 {strides = array<i32>} : memref<3x8xf32, #tpu.memory_space<vmem>>, vector<3x8xf32>,
    %40 = vector.extract_strided_slice %21 {offsets = [2, 0], sizes = [2, 8], strides = [1, 1]} : vector<6x8xf32> to vector<2x8xf32>
    %41 = vector.extract_strided_slice %40 {offsets = [0, 0], sizes = [1, 8], strides = [1, 1]} : vector<2x8xf32> to vector<1x8xf32>
    %42 = vector.extract_strided_slice %40 {offsets = [1, 0], sizes = [1, 8], strides = [1, 1]} : vector<2x8xf32> to vector<1x8xf32>
    %43 = arith.subf %41, %42 : vector<1x8xf32>
    %44 = math.exp %43 : vector<1x8xf32>
    %cst_20 = arith.constant 1.000000e+00 : f32
    %45 = vector.broadcast %cst_20 : f32 to vector<1x8xf32>
    %46 = arith.addf %45, %44 : vector<1x8xf32>
    %cst_21 = arith.constant 1.000000e+00 : f32
    %47 = vector.broadcast %cst_21 : f32 to vector<1x8xf32>
    %48 = arith.divf %47, %46 : vector<1x8xf32>
    %cst_22 = arith.constant 1.000000e+00 : f32
    %49 = vector.broadcast %cst_22 : f32 to vector<1x8xf32>
    %50 = arith.subf %49, %48 : vector<1x8xf32>
    %51 = tpu.concatenate %50, %48 in 0 : vector<1x8xf32>, vector<1x8xf32> -> vector<2x8xf32>
    %c0_23 = arith.constant 0 : index
    %c0_24 = arith.constant 0 : index
    %52 = vector.load %arg5[%c0_23, %c0_24] : memref<3x8xf32, #tpu.memory_space<vmem>>, vector<1x8xf32>
    %53 = vector.broadcast %52 : vector<1x8xf32> to vector<2x8xf32>
    %54 = arith.mulf %51, %53 : vector<2x8xf32>
    %55 = vector.extract_strided_slice %21 {offsets = [4, 0], sizes = [2, 8], strides = [1, 1]} : vector<6x8xf32> to vector<2x8xf32>
    %56 = vector.extract_strided_slice %55 {offsets = [0, 0], sizes = [1, 8], strides = [1, 1]} : vector<2x8xf32> to vector<1x8xf32>
    %57 = vector.extract_strided_slice %55 {offsets = [1, 0], sizes = [1, 8], strides = [1, 1]} : vector<2x8xf32> to vector<1x8xf32>
    %58 = arith.subf %56, %57 : vector<1x8xf32>
    %59 = math.exp %58 : vector<1x8xf32>
    %cst_25 = arith.constant 1.000000e+00 : f32
    %60 = vector.broadcast %cst_25 : f32 to vector<1x8xf32>
    %61 = arith.addf %60, %59 : vector<1x8xf32>
    %cst_26 = arith.constant 1.000000e+00 : f32
    %62 = vector.broadcast %cst_26 : f32 to vector<1x8xf32>
    %63 = arith.divf %62, %61 : vector<1x8xf32>
    %cst_27 = arith.constant 1.000000e+00 : f32
    %64 = vector.broadcast %cst_27 : f32 to vector<1x8xf32>
    %65 = arith.subf %64, %63 : vector<1x8xf32>
    %66 = tpu.concatenate %65, %63 in 0 : vector<1x8xf32>, vector<1x8xf32> -> vector<2x8xf32>
    %c1 = arith.constant 1 : index
    %c0_28 = arith.constant 0 : index
    %67 = vector.load %arg5[%c1, %c0_28] : memref<3x8xf32, #tpu.memory_space<vmem>>, vector<1x8xf32>
    %68 = vector.broadcast %67 : vector<1x8xf32> to vector<2x8xf32>
    %69 = arith.mulf %66, %68 : vector<2x8xf32>
    %cst_29 = arith.constant 1.000000e+00 : f32
    %70 = vector.broadcast %cst_29 : f32 to vector<1x8xf32>
    %71 = arith.subf %70, %16 : vector<1x8xf32>
    %72 = tpu.concatenate %54, %69, %71 in 0 : vector<2x8xf32>, vector<2x8xf32>, vector<1x8xf32> -> vector<5x8xf32>
    %c0_30 = arith.constant 0 : index
    %c0_31 = arith.constant 0 : index
    %73 = vector.load %arg6[%c0_30, %c0_31] : memref<5x8xf32, #tpu.memory_space<vmem>>, vector<5x8xf32>
    tpu.vector_store %arg6[%c0_30, %c0_31], %72 {strides = array<i32>} : memref<5x8xf32, #tpu.memory_space<vmem>>, vector<5x8xf32>,
    return
  }
}

</mosaic_0001>

<bundles_post_ra>
// kernel: tpu_custom_call.1
= control target key start
LH: loop header
LB: loop body
LE: loop exit
PB: predicated region body
PF: predicated region fallthrough
CT: control target
= control target key end

     0   :  { %12 = vsyncpa [#allocation3], 0  ;;  %v484_v3 = vmov 0.0|0.0   ;;  %vm485_vm0 = vmmov 0   ;;  %v486_v6 = vmov 0.0   ;;  %v487_v10 = vmov 0   ;;  %s620_s0 = inlined_call_operand.vmem [shape: f32[32,8], index: 0, kind: input, shape index: {}]   ;;  %s621_s1 = inlined_call_operand.vmem [shape: f32[33,32], index: 1, kind: input, shape index: {}]   ;;  %s622_s2 = inlined_call_operand.vmem [shape: f32[33,1], index: 2, kind: input, shape index: {}]   ;;  %s623_s3 = inlined_call_operand.vmem [shape: f32[6,32], index: 3, kind: input, shape index: {}]   ;;  %s624_s4 = inlined_call_operand.vmem [shape: f32[6,1], index: 4, kind: input, shape index: {}]   ;;  %s625_s5 = inlined_call_operand.hbm [shape: f32[3,8], index: 5, kind: output, shape index: {0}]   ;;  %s626_s6 = inlined_call_operand.hbm [shape: f32[5,8], index: 6, kind: output, shape index: {1}]  }
   0x1   :  { %v24_v0 = vld [vmem:[%s620_s0] sm:$0xff]  ;;  %v25_v1 = vld [vmem:[%s620_s0 + $0x8] sm:$0xff]  ;;  %v26_v2 = vld [vmem:[%s620_s0 + $0x10] sm:$0xff]  ;;  %404 = vmatprep.subr.bf16.mxu0 %v484_v3  ;;  %416 = vmatprep.subr.bf16.mxu1 %v484_v3 }
   0x2   :  { %v405_v4 = vpack.c.bf16 %v25_v1, %v24_v0  ;;  %v27_v5 = vld [vmem:[%s620_s0 + $0x18] sm:$0xff]  ;;  %378 = vmatprep.mubr.msk.f32.mxu0 %vm485_vm0, %v486_v6  ;;  %387 = vmatprep.mubr.msk.f32.mxu1 %vm485_vm0, %v486_v6  ;;  %v33_v8 = vld [vmem:[%s622_s2] sm:$0xff]  ;;  %v35_v9 = vld [vmem:[%s622_s2 + $0x10] sm:$0xff] }
   0x3   :  { %v408_v7 = vpack.c.bf16 %v27_v5, %v26_v2  ;;  %426 = vset.pattern.permute.xlu0 %v487_v10  ;;  %427 = vset.pattern.permute.xlu1 %v487_v10 }
   0x4   :  { %406 = vmatpush3.bf16.msra.mxu0 %v405_v4  ;;  %418 = vmatpush3.bf16.msra.mxu1 %v405_v4 }
   0x5   :  { %407 = vmatprep.subr.bf16.mxu0 %v484_v3  ;;  %417 = vmatprep.subr.bf16.mxu1 %v484_v3 }
   0x6   :  { %13 = vsyncpa [#allocation5], 0  ;;  %40 = vperm.xlu0 %426, %v33_v8   ;;  %50 = vperm.xlu1 %427, %v35_v9   ;;  %v28_v11 = vld [vmem:[%s621_s1] sm:$0xff]  ;;  %vm63_vm1 = vcmask 261120   ;;  %v31_v12 = vld [vmem:[%s621_s1 + $0x18] sm:$0xff]  ;;  %v274_v60 = vlaneseq  ;;  %vm272_vm2 = vcmask 1040384  }
   0x7   :  { %v34_v13 = vld [vmem:[%s622_s2 + $0x8] sm:$0xff]  ;;  %v36_v14 = vld [vmem:[%s622_s2 + $0x18] sm:$0xff]  ;;  %v32_v16 = vld [vmem:[%s621_s1 + $0x20] sm:$0x1]  ;;  %vm283_vm3 = vcmask 1041408   ;;  %vm285_vm4 = vcmask 59392  }
   0x8   :  { %409 = vmatpush3.bf16.msra.mxu0 %v408_v7  ;;  %419 = vmatpush3.bf16.msra.mxu1 %v408_v7  ;;  %v29_v15 = vld [vmem:[%s621_s1 + $0x8] sm:$0xff]  ;;  %v180_v17 = vld [vmem:[%s624_s4] sm:$0x3f]  ;;  %v30_v19 = vld [vmem:[%s621_s1 + $0x10] sm:$0xff]  ;;  %v275_v61 = vshrl.u32 %v274_v60, 7 }
   0x9   :  { %410 = vmatprep.subr.bf16.mxu1 %v484_v3  ;;  %v37_v18 = vld [vmem:[%s622_s2 + $0x20] sm:$0x1] }
   0xa   :  { %45 = vperm.xlu0 %426, %v34_v13   ;;  %55 = vperm.xlu1 %427, %v36_v14   ;;  %v179_v44 = vld [vmem:[%s623_s3] sm:$0x3f]  ;;  %v276_v63 = vsub.s32 0, %v275_v61  ;;  %s488_s3 = smov [#allocation2]  }
   0xb   :  { %379 = vmatmul.mubr.msk.f32.vlgmr.msra.gmra.mrb[0].mxu0 %vm63_vm1, %v28_v11  ;;  %388 = vmatmul.mubr.msk.f32.vlgmr.msra.gmra.mrb[0].mxu1 %vm63_vm1, %v31_v12  ;;  %s326_s4 = sshll.u32 %s488_s3, 4  ;;  %s327_s4 = int_to_ptr.vmem [resolvable:$true] %s326_s4 }
   0xc   :  { %381 = vmatprep.mubr.msk.f32.mxu0 %vm485_vm0, %v486_v6  ;;  %390 = vmatprep.mubr.msk.f32.mxu1 %vm485_vm0, %v486_v6  ;;  %s436_s26 = scalar_lea.vmem %s327_s4, 64  ;;  %p441_p1 = scmp.lt.s32.totalorder %s327_s4, %s327_s4 }
   0xd   :  { %p437_p0 = scmp.ne.s32.totalorder %s327_s4, %s436_s26  ;;  %p442_p2 = scmp.lt.s32.totalorder %s436_s26, %s436_s26 }
   0xe   :  { %183 = vperm.xlu0 %426, %v180_v17   ;;  %60 = vperm.xlu1 %427, %v37_v18  }
   0xf   :  { %382 = vmatmul.mubr.msk.f32.gmra.mrb[2].mxu0 %vm63_vm1, %v29_v15  ;;  %391 = vmatmul.mubr.msk.f32.gmra.mrb[2].mxu1 %vm63_vm1, %v32_v16  ;;  %p443_p3 = por %p442_p2, %p441_p1 }
  0x10   :  { %384 = vmatprep.mubr.msk.f32.mxu0 %vm485_vm0, %v486_v6  ;;  %401 = vmatprep.mubr.msk.f32.mxu1 %vm485_vm0, %v486_v6 }
  0x11   :  { %p444_p4 = pnand %p443_p3, %p437_p0 }
  0x13   :  { %385 = vmatmul.mubr.msk.f32.gmra.mrb[4].mxu0 %vm63_vm1, %v30_v19 }
  0x85   :  { %v41_v20 = vpop.permute.xlu0 %40  ;;  %v51_v21 = vpop.permute.xlu1 %50 }
  0x89   :  { %v46_v26 = vpop.permute.xlu0 %45  ;;  %v56_v33 = vpop.permute.xlu1 %55 }
  0x8d   :  { %v61_v45 = vpop.permute.xlu1 %60  ;;  %v184_v49 = vpop.permute.xlu0 %183 }
  0xde   :  { %v145_v22 = vpop.f32.mrb[0].mxu0  ;;  %v160_v23 = vpop.f32.mrb[0].mxu1 }
  0xdf   :  { %v380_v24 = vpop.f32.mrb[1].mxu0  ;;  %v389_v25 = vpop.f32.mrb[1].mxu1  ;;  %v146_v27 = vadd.f32 %v145_v22, %v41_v20  ;;  %v161_v35 = vadd.f32 %v160_v23, %v56_v33 }
  0xe1   :  { %v169_v34 = vmax.f32 %v146_v27, 0.0  ;;  %v172_v41 = vmax.f32 %v161_v35, 0.0 }
  0xe2   :  { %v150_v28 = vpop.f32.mrb[2].mxu0  ;;  %v165_v29 = vpop.f32.mrb[2].mxu1 }
  0xe3   :  { %v151_v30 = vadd.f32 %v150_v28, %v46_v26  ;;  %v383_v31 = vpop.f32.mrb[3].mxu0  ;;  %v392_v32 = vpop.f32.mrb[3].mxu1  ;;  %v166_v46 = vadd.f32 %v165_v29, %v61_v45 }
  0xe5   :  { %v170_v36 = vmax.f32 %v151_v30, 0.0  ;;  %v173_v47 = vsub.f32 0.0, %v166_v46 }
  0xe6   :  { %v155_v37 = vpop.f32.mrb[4].mxu0 }
  0xe7   :  { %v411_v38 = vpack.c.bf16 %v170_v36, %v169_v34  ;;  %v156_v39 = vadd.f32 %v155_v37, %v51_v21  ;;  %v386_v40 = vpop.f32.mrb[5].mxu0  ;;  %v174_v48 = vmul.f32 1.442695, %v173_v47 }
  0xe9   :  { %v171_v42 = vmax.f32 %v156_v39, 0.0  ;;  %412 = vmatpush3.bf16.msra.mxu1 %v411_v38  ;;  %428 = vpow2.f32 %v174_v48 }
  0xea   :  { %413 = vmatprep.subr.bf16.mxu1 %v484_v3 }
  0xeb   :  { %v414_v43 = vpack.c.bf16 %v172_v41, %v171_v42 }
  0xed   :  { %415 = vmatpush3.bf16.msra.mxu1 %v414_v43 }
  0xf0   :  { %402 = vmatmul.mubr.msk.f32.vlgmr.msra.gmra.mrb[4].mxu1 %vm63_vm1, %v179_v44 }
  0xf3   :  { %v429_v56 = vpop.eup %428 }
  0xf4   :  { %v176_v57 = vadd.f32 1.0, %v429_v56 }
 0x1c3   :  { %v255_v50 = vpop.f32.mrb[4].mxu1 }
 0x1c4   :  { %v256_v51 = vadd.f32 %v255_v50, %v184_v49  ;;  %v403_v52 = vpop.f32.mrb[5].mxu1 }
 0x1c6   :  { %v260_v53 = vrot.slane %v256_v51, 1 }
 0x1c8   :  { %v262_v54 = vsub.f32 %v256_v51, %v260_v53 }
 0x1ca   :  { %v263_v55 = vmul.f32 1.442695, %v262_v54 }
 0x1cc   :  { %430 = vpow2.f32 %v263_v55 }
 0x1cd   :  { %432 = vrcp.f32 %v176_v57 }
 0x1d6   :  { %v431_v58 = vpop.eup %430 }
 0x1d7   :  { %v265_v59 = vadd.f32 1.0, %v431_v58  ;;  %v433_v62 = vpop.eup %432 }
 0x1d8   :  { %v279_v1 = vsub.f32 1.0, %v433_v62  ;;  %v277_v4 = vrot.slane %v433_v62, %v276_v63 }
 0x1d9   :  { %434 = vrcp.f32 %v265_v59 }
 0x1da   :  { %v281_v7 = vrot.slane %v279_v1, 6 }
 0x1e3   :  { %v435_v0 = vpop.eup %434 }
 0x1e4   :  { %v268_v2 = vsub.f32 1.0, %v435_v0  ;;  %v270_v3 = vrot.slane %v435_v0, 7 }
 0x1e6   :  { %v273_v5 = vsel %vm272_vm2, %v268_v2, %v270_v3 }
 0x1e7   :  { %v278_v6 = vmul.f32 %v277_v4, %v273_v5 }
 0x1e9   :  { %v284_v8 = vsel %vm283_vm3, %v278_v6, %v281_v7 }
 0x1ea   :  { %286 = vst.msk [vmem:[#allocation2] sm:$0x7] %vm285_vm4, %v284_v8 }
 0x1eb   :  { %447 = shalt.err (!%p444_p4)
}
 0x1ec   :  { %s448_s29 = scalar_lea.hbm %s625_s5, 64 }
 0x1ed   :  { %p449_p5 = scmp.ne.s32.totalorder %s625_s5, %s448_s29  ;;  %p452_p6 = scmp.lt.u32.totalorder %s448_s29, %s625_s5 }
 0x1ef   :  { %p454_p7 = pnand %p452_p6, %p449_p5 }
 0x1f1   :  { %457 = shalt.err (!%p454_p7)
}
 0x1f2   :  { %329 = dma.vmem_to_hbm [thread:$0]  %s327_s4, 64, %s625_s5, [#allocation3]   ;;  %v299_v9 = vrot.slane %v268_v2, 4  ;;  %v288_v10 = vrot.slane %v268_v2, 2  ;;  %v301_v11 = vrot.slane %v435_v0, 3  ;;  %v290_v12 = vrot.slane %v435_v0, 1 }
 0x1f3   :  { %v354_v13 = vld [vmem:[#allocation2] ss:$0 sm:$0xff]  ;;  %v355_v15 = vld [vmem:[#allocation2 + $0x1] ss:$0 sm:$0xff]  ;;  %s489_s11 = smov [#allocation4]   ;;  %vm316_vm5 = vcmask 1043456  }
 0x1f4   :  { %v303_v14 = vsel %vm272_vm2, %v299_v9, %v301_v11  ;;  %v292_v17 = vsel %vm272_vm2, %v288_v10, %v290_v12  ;;  %s336_s12 = sshll.u32 %s489_s11, 4  ;;  %v313_v20 = vrot.slane %v279_v1, 4  ;;  %vm318_vm6 = vcmask 61440   ;;  %s337_s12 = int_to_ptr.vmem [resolvable:$true] %s336_s12 }
 0x1f5   :  { %v309_v16 = vmul.f32 %v355_v15, %v303_v14  ;;  %v298_v18 = vmul.f32 %v354_v13, %v292_v17  ;;  %s458_s5 = scalar_lea.vmem %s337_s12, 128  ;;  %p463_p9 = scmp.lt.s32.totalorder %s337_s12, %s337_s12 }
 0x1f6   :  { %p459_p8 = scmp.ne.s32.totalorder %s337_s12, %s458_s5  ;;  %p464_p10 = scmp.lt.s32.totalorder %s458_s5, %s458_s5 }
 0x1f7   :  { %v311_v19 = vrot.slane %v309_v16, 6 }
 0x1f8   :  { %p465_p11 = por %p464_p10, %p463_p9 }
 0x1f9   :  { %v315_v21 = vsel %vm283_vm3, %v298_v18, %v311_v19 }
 0x1fa   :  { %v317_v22 = vsel %vm316_vm5, %v315_v21, %v313_v20  ;;  %p466_p12 = pnand %p465_p11, %p459_p8 }
 0x1fb   :  { %319 = vst.msk [vmem:[#allocation4] sm:$0x1f] %vm318_vm6, %v317_v22 }
 0x1fc   :  { %469 = shalt.err (!%p466_p12)
}
 0x1fd   :  { %s470_s15 = scalar_lea.hbm %s626_s6, 128 }
 0x1fe   :  { %p471_p13 = scmp.ne.s32.totalorder %s626_s6, %s470_s15  ;;  %p474_p0 = scmp.lt.u32.totalorder %s470_s15, %s626_s6 }
 0x200   :  { %p476_p1 = pnand %p474_p0, %p471_p13 }
 0x202   :  { %479 = shalt.err (!%p476_p1)
}
 0x203   :  { %339 = dma.vmem_to_hbm [thread:$0]  %s337_s12, 128, %s626_s6, [#allocation5]  }
 0x204   :  { %480 = dma.done.wait [#allocation3], 64  }
 0x205   :  { %481 = vsyncadd [#allocation3], 4294967232 }
 0x206   :  { %482 = dma.done.wait [#allocation5], 128  }
 0x207   :  { %483 = vsyncadd [#allocation5], 4294967168 }
 0x208   :  { %346 = vsyncpa [#allocation3], 1 }
 0x209   :  { %347 = vsyncpa [#allocation5], 1 }

</bundles_post_ra>
